<compile_context>
chip_gen: v5e
topology: v5e:2x2
jax: 0.10.0
libtpu: 0.0.40
codegen_flags: <defaults>
</compile_context>

<pallas_src>
import math

import jax
import jax.numpy as jnp
from jax import lax
from jax.experimental import pallas as pl
from jax.experimental.pallas import tpu as pltpu

_INV_SQRT2 = 0.7071067811865475


def _gelu_erf(x):
    # Exact (erf-based) gelu, matching the PyTorch reference.
    return x * 0.5 * (1.0 + lax.erf(x * _INV_SQRT2))


def _round_up(a, b):
    return (a + b - 1) // b * b


# -----------------------------------------------------------------------------
# Kernels
# -----------------------------------------------------------------------------
def ffn_kernel_acc(x_ref, w1_ref, b1_ref, w2_ref, b2_ref, o_ref, acc_ref):
    """Variant with an f32 accumulator scratch (used when the output is not f32).

    x_ref:  (tm, H)   token tile (k-invariant)
    w1_ref: (H, tk)   fc1 weight k-tile (in x out layout)
    b1_ref: (1, tk)   fc1 bias k-tile
    w2_ref: (tk, H)   fc2 weight k-tile
    b2_ref: (1, H)    fc2 bias
    o_ref:  (tm, H)   output tile (resident across k)
    acc_ref:(tm, H)   f32 accumulator scratch
    """
    k = pl.program_id(1)

    @pl.when(k == 0)
    def _init():
        acc_ref[...] = jnp.zeros_like(acc_ref)

    h = jnp.dot(x_ref[...], w1_ref[...], preferred_element_type=jnp.float32)
    h = _gelu_erf(h + b1_ref[...])
    # Cast back to the param dtype so the second matmul runs at full MXU rate
    # (bf16 weights -> bf16 x bf16 matmul, accumulation stays f32).
    h = h.astype(w2_ref.dtype)
    acc_ref[...] += jnp.dot(h, w2_ref[...], preferred_element_type=jnp.float32)

    @pl.when(k == pl.num_programs(1) - 1)
    def _finalize():
        o_ref[...] = (acc_ref[...] + b2_ref[...]).astype(o_ref.dtype)


def ffn_kernel_direct(x_ref, w1_ref, b1_ref, w2_ref, b2_ref, o_ref):
    """f32-output variant: accumulate straight into the resident output block.

    Saves tm*H*4 bytes of VMEM scratch plus the finalize copy.
    """
    k = pl.program_id(1)

    @pl.when(k == 0)
    def _init():
        o_ref[...] = jnp.broadcast_to(b2_ref[...], o_ref.shape).astype(o_ref.dtype)

    h = jnp.dot(x_ref[...], w1_ref[...], preferred_element_type=jnp.float32)
    h = _gelu_erf(h + b1_ref[...])
    h = h.astype(w2_ref.dtype)
    o_ref[...] += jnp.dot(h, w2_ref[...], preferred_element_type=jnp.float32)


# -----------------------------------------------------------------------------
# Generation-aware configuration
# -----------------------------------------------------------------------------
def _tpu_generation():
    try:
        kind = jax.devices()[0].device_kind.lower()
    except Exception:
        return "unknown"
    if "v5 lite" in kind or "v5e" in kind or "v5lite" in kind:
        return "v5e"
    if "v6" in kind:
        return "v6e"
    if "v7" in kind:
        return "v7x"
    return "unknown"


# tm  : token-tile rows needed to keep weight re-streaming MXU-bound
#       (~240 on v5e, ~670 on v6e, ~310 on v7x); multiples of 8 / 256 preferred.
# tk  : 4H tile; larger on 128-MiB-VMEM parts to halve grid-step overhead.
# vmem: limit derived from physical VMEM (128 MiB v5e/v6e, 64 MiB v7x) with
#       headroom for compiler-internal scratch.
_GEN_CONFIG = {
    "v5e":     dict(tm=256, tk=512,  vmem=96 * 1024 * 1024),
    "v6e":     dict(tm=768, tk=1024, vmem=96 * 1024 * 1024),
    "v7x":     dict(tm=384, tk=512,  vmem=48 * 1024 * 1024),
    "unknown": dict(tm=256, tk=512,  vmem=48 * 1024 * 1024),
}


def _pick_tk(H4, target):
    """Pick tk that divides 4H exactly so the weights never need padding."""
    if H4 <= target:
        return H4, H4
    t = (target // 128) * 128
    while t >= 128:
        if H4 % t == 0:
            return t, H4
        t -= 128
    # Rare fallback: no 128-multiple divisor of 4H <= target -> pad (exact,
    # since gelu(0)=0 and padded w2 rows contribute nothing, but copies weights).
    tk = (target // 128) * 128
    return tk, _round_up(H4, tk)


def _shrink_tm_to_fit(tm, tk, H, dtype, vmem_limit, need_acc):
    """Rough double-buffered VMEM budget; halve tm until it fits the limit."""
    isz = jnp.dtype(dtype).itemsize

    def resident(t):
        b = 2 * (t * H + H * tk + tk + tk * H + H) * isz  # double-buffered inputs
        b += 2 * t * H * isz                              # output block
        if need_acc:
            b += t * H * 4                                # f32 accumulator scratch
        return b

    while tm > 8 and resident(tm) > 0.8 * vmem_limit:
        tm = max(8, _round_up(tm // 2, 8))
    return tm


# -----------------------------------------------------------------------------
# Wrapper
# -----------------------------------------------------------------------------
def position_wise_feed_forward(x, w1, b1, w2, b2, *, tm=None, tk=None):
    """x: [batch, seq, H]; w1: [H, 4H]; b1: [4H]; w2: [4H, H]; b2: [H]."""
    B, S, H = x.shape
    H4 = w1.shape[1]
    M = B * S

    cfg = _GEN_CONFIG[_tpu_generation()]
    vmem_limit = cfg["vmem"]

    if tk is None:
        tk, H4_pad = _pick_tk(H4, cfg["tk"])
    else:
        H4_pad = _round_up(H4, tk)

    out_dtype = x.dtype
    need_acc = out_dtype != jnp.float32

    if tm is None:
        tm = min(cfg["tm"], _round_up(M, 8))
        tm = _shrink_tm_to_fit(tm, tk, H, x.dtype, vmem_limit, need_acc)
    M_pad = _round_up(M, tm)

    x2d = x.reshape(M, H)
    if M_pad != M:
        x2d = jnp.pad(x2d, ((0, M_pad - M), (0, 0)))

    b1_2d = b1.reshape(1, H4)
    b2_2d = b2.reshape(1, H)
    if H4_pad != H4:
        w1 = jnp.pad(w1, ((0, 0), (0, H4_pad - H4)))
        b1_2d = jnp.pad(b1_2d, ((0, 0), (0, H4_pad - H4)))
        w2 = jnp.pad(w2, ((0, H4_pad - H4), (0, 0)))

    grid = (M_pad // tm, H4_pad // tk)

    # Honest HBM traffic estimate: weights are re-streamed once per M-tile.
    w_isz = jnp.dtype(w1.dtype).itemsize
    a_isz = jnp.dtype(x.dtype).itemsize
    n_mtiles = M_pad // tm
    cost = pl.CostEstimate(
        flops=4 * M * H * H4,              # 2*M*H*H4 (fc1) + 2*M*H4*H (fc2)
        transcendentals=M * H4,            # erf per fc1 activation
        bytes_accessed=(
            n_mtiles * (H * H4_pad + H4_pad * H + H4_pad + H) * w_isz
            + (M * H + M_pad * H) * a_isz
        ),
    )

    if need_acc:
        kernel = ffn_kernel_acc
        scratch_shapes = [pltpu.VMEM((tm, H), jnp.float32)]
    else:
        kernel = ffn_kernel_direct
        scratch_shapes = []

    # TODO(synk): on v7x with H >= 8192, add a third grid axis over the output
    # H dimension (x/out/acc all scale with H and would exceed 64 MiB VMEM).
    out = pl.pallas_call(
        kernel,
        out_shape=jax.ShapeDtypeStruct((M_pad, H), out_dtype),
        grid_spec=pltpu.PrefetchScalarGridSpec(
            num_scalar_prefetch=0,
            grid=grid,
            in_specs=[
                pl.BlockSpec((tm, H), lambda i, k: (i, 0)),   # x token tile
                pl.BlockSpec((H, tk), lambda i, k: (0, k)),   # w1 k-tile
                pl.BlockSpec((1, tk), lambda i, k: (0, k)),   # b1 k-tile
                pl.BlockSpec((tk, H), lambda i, k: (k, 0)),   # w2 k-tile
                pl.BlockSpec((1, H), lambda i, k: (0, 0)),    # b2 (invariant)
            ],
            out_specs=pl.BlockSpec((tm, H), lambda i, k: (i, 0)),
            scratch_shapes=scratch_shapes,
        ),
        compiler_params=pltpu.CompilerParams(
            # M-tile axis is independent ("parallel" -> megacore shardable);
            # the k axis carries the accumulator so it must stay "arbitrary".
            dimension_semantics=("parallel", "arbitrary"),
            vmem_limit_bytes=vmem_limit,
        ),
        cost_estimate=cost,
    )(x2d, w1, b1_2d, w2, b2_2d)

    if M_pad != M:
        out = out[:M]
    return out.reshape(B, S, H)


if __name__ == "__main__":
    # args.hidden_size = 32  -> fc1: 32 -> 128, fc2: 128 -> 32
    batch, seq, hidden = 2, 8, 32
    hidden4 = hidden * 4

    key = jax.random.PRNGKey(0)
    kx, kw1, kb1, kw2, kb2 = jax.random.split(key, 5)

    x = jax.random.normal(kx, (batch, seq, hidden), dtype=jnp.float32)
    # nn.Linear stores weight as [out, in]; we keep [in, out] so the kernel
    # computes x @ W directly.
    w1 = jax.random.normal(kw1, (hidden, hidden4), dtype=jnp.float32) * 0.05
    b1 = jax.random.normal(kb1, (hidden4,), dtype=jnp.float32) * 0.05
    w2 = jax.random.normal(kw2, (hidden4, hidden), dtype=jnp.float32) * 0.05
    b2 = jax.random.normal(kb2, (hidden,), dtype=jnp.float32) * 0.05

    def ref(xx, ww1, bb1, ww2, bb2):
        h = xx @ ww1 + bb1
        h = h * 0.5 * (1.0 + lax.erf(h / math.sqrt(2.0)))
        return h @ ww2 + bb2

    # f32 path (direct-accumulate variant, no scratch).
    y = jax.block_until_ready(position_wise_feed_forward(x, w1, b1, w2, b2))
    y_ref = ref(x, w1, b1, w2, b2)
    assert jnp.allclose(y, y_ref, atol=1e-5, rtol=1e-5), "f32 mismatch vs reference"

    # bf16 path (f32-accumulator scratch variant); looser tolerance since the
    # gelu slab is rounded to bf16 between the two matmuls (mixed precision).
    xb, w1b, b1b, w2b, b2b = (t.astype(jnp.bfloat16) for t in (x, w1, b1, w2, b2))
    yb = jax.block_until_ready(position_wise_feed_forward(xb, w1b, b1b, w2b, b2b))
    yb_ref = ref(*(t.astype(jnp.float32) for t in (xb, w1b, b1b, w2b, b2b)))
    assert jnp.allclose(yb.astype(jnp.float32), yb_ref, atol=3e-2, rtol=3e-2), \
        "bf16 mismatch vs reference"

    print("KERNEL_OK")
</pallas_src>

<mosaic_0001>
module attributes {stable_mosaic.version = 11 : i64} {
  func.func @ffn_kernel_direct(%arg0: i32, %arg1: i32, %arg2: memref<16x32xf32, #tpu.memory_space<vmem>>, %arg3: memref<32x128xf32, #tpu.memory_space<vmem>>, %arg4: memref<1x128xf32, #tpu.memory_space<vmem>>, %arg5: memref<128x32xf32, #tpu.memory_space<vmem>>, %arg6: memref<1x32xf32, #tpu.memory_space<vmem>>, %arg7: memref<16x32xf32, #tpu.memory_space<vmem>>) attributes {dimension_semantics = [#tpu.dimension_semantics<parallel>, #tpu.dimension_semantics<arbitrary>], iteration_bounds = array<i64: 1, 1>, scalar_prefetch = 0 : i64, scratch_operands = 0 : i64, tpu.core_type = #tpu.core_type<tc>, window_params = [{transform_indices = @transform_0, window_bounds = array<i64: 16, 32>}, {transform_indices = @transform_1, window_bounds = array<i64: 32, 128>}, {transform_indices = @transform_2, window_bounds = array<i64: 1, 128>}, {transform_indices = @transform_3, window_bounds = array<i64: 128, 32>}, {pipeline_mode = #tpu.pipeline_mode<synchronous>, transform_indices = @transform_4, window_bounds = array<i64: 1, 32>}, {transform_indices = @transform_5, window_bounds = array<i64: 16, 32>}]} {
    %c0_i32 = arith.constant 0 : i32
    %0 = arith.cmpi eq, %arg1, %c0_i32 : i32
    %1 = arith.extui %0 : i1 to i32
    %c0_i32_0 = arith.constant 0 : i32
    %2 = arith.cmpi ne, %1, %c0_i32_0 : i32
    scf.if %2 {
      %c0_16 = arith.constant 0 : index
      %c0_17 = arith.constant 0 : index
      %22 = vector.load %arg6[%c0_16, %c0_17] : memref<1x32xf32, #tpu.memory_space<vmem>>, vector<1x32xf32>
      %23 = vector.shape_cast %22 : vector<1x32xf32> to vector<1x32xf32>
      %24 = vector.broadcast %23 : vector<1x32xf32> to vector<16x32xf32>
      %c0_18 = arith.constant 0 : index
      %c0_19 = arith.constant 0 : index
      %25 = vector.load %arg7[%c0_18, %c0_19] : memref<16x32xf32, #tpu.memory_space<vmem>>, vector<16x32xf32>
      tpu.vector_store %arg7[%c0_18, %c0_19], %24 {strides = array<i32>} : memref<16x32xf32, #tpu.memory_space<vmem>>, vector<16x32xf32>,
    } else {
    }
    %c0 = arith.constant 0 : index
    %c0_1 = arith.constant 0 : index
    %3 = vector.load %arg2[%c0, %c0_1] : memref<16x32xf32, #tpu.memory_space<vmem>>, vector<16x32xf32>
    %c0_2 = arith.constant 0 : index
    %c0_3 = arith.constant 0 : index
    %4 = vector.load %arg3[%c0_2, %c0_3] : memref<32x128xf32, #tpu.memory_space<vmem>>, vector<32x128xf32>
    %cst = arith.constant dense<0.000000e+00> : vector<16x128xf32>
    %5 = tpu.matmul %3, %4, %cst {dimension_numbers = #tpu.dot_dimension_numbers<[1], [0], [0], [1], [0, 0, 1, 1], [], []>} : vector<16x32xf32>, vector<32x128xf32>, vector<16x128xf32> -> vector<16x128xf32>
    %c0_4 = arith.constant 0 : index
    %c0_5 = arith.constant 0 : index
    %6 = vector.load %arg4[%c0_4, %c0_5] : memref<1x128xf32, #tpu.memory_space<vmem>>, vector<1x128xf32>
    %7 = vector.broadcast %6 : vector<1x128xf32> to vector<16x128xf32>
    %8 = arith.addf %5, %7 : vector<16x128xf32>
    %cst_6 = arith.constant 5.000000e-01 : f32
    %9 = vector.broadcast %cst_6 : f32 to vector<16x128xf32>
    %10 = arith.mulf %8, %9 : vector<16x128xf32>
    %cst_7 = arith.constant 0.707106769 : f32
    %11 = vector.broadcast %cst_7 : f32 to vector<16x128xf32>
    %12 = arith.mulf %8, %11 : vector<16x128xf32>
    %13 = math.erf %12 : vector<16x128xf32>
    %cst_8 = arith.constant 1.000000e+00 : f32
    %14 = vector.broadcast %cst_8 : f32 to vector<16x128xf32>
    %15 = arith.addf %14, %13 : vector<16x128xf32>
    %16 = arith.mulf %10, %15 : vector<16x128xf32>
    %c0_9 = arith.constant 0 : index
    %c0_10 = arith.constant 0 : index
    %17 = vector.load %arg7[%c0_9, %c0_10] : memref<16x32xf32, #tpu.memory_space<vmem>>, vector<16x32xf32>
    %c0_11 = arith.constant 0 : index
    %c0_12 = arith.constant 0 : index
    %18 = vector.load %arg5[%c0_11, %c0_12] : memref<128x32xf32, #tpu.memory_space<vmem>>, vector<128x32xf32>
    %cst_13 = arith.constant dense<0.000000e+00> : vector<16x32xf32>
    %19 = tpu.matmul %16, %18, %cst_13 {dimension_numbers = #tpu.dot_dimension_numbers<[1], [0], [0], [1], [0, 0, 1, 1], [], []>} : vector<16x128xf32>, vector<128x32xf32>, vector<16x32xf32> -> vector<16x32xf32>
    %20 = arith.addf %17, %19 : vector<16x32xf32>
    %c0_14 = arith.constant 0 : index
    %c0_15 = arith.constant 0 : index
    %21 = vector.load %arg7[%c0_14, %c0_15] : memref<16x32xf32, #tpu.memory_space<vmem>>, vector<16x32xf32>
    tpu.vector_store %arg7[%c0_14, %c0_15], %20 {strides = array<i32>} : memref<16x32xf32, #tpu.memory_space<vmem>>, vector<16x32xf32>,
    return
  }
  func.func @transform_0(%arg0: i32, %arg1: i32) -> (i32, i32) {
    %c0_i32 = arith.constant 0 : i32
    %c0_i32_0 = arith.constant 0 : i32
    return %arg0, %c0_i32 : i32, i32
  }
  func.func @transform_1(%arg0: i32, %arg1: i32) -> (i32, i32) {
    %c0_i32 = arith.constant 0 : i32
    %c0_i32_0 = arith.constant 0 : i32
    return %c0_i32, %arg1 : i32, i32
  }
  func.func @transform_2(%arg0: i32, %arg1: i32) -> (i32, i32) {
    %c0_i32 = arith.constant 0 : i32
    %c0_i32_0 = arith.constant 0 : i32
    return %c0_i32, %arg1 : i32, i32
  }
  func.func @transform_3(%arg0: i32, %arg1: i32) -> (i32, i32) {
    %c0_i32 = arith.constant 0 : i32
    %c0_i32_0 = arith.constant 0 : i32
    return %arg1, %c0_i32 : i32, i32
  }
  func.func @transform_4(%arg0: i32, %arg1: i32) -> (i32, i32) {
    %c0_i32 = arith.constant 0 : i32
    %c0_i32_0 = arith.constant 0 : i32
    %c0_i32_1 = arith.constant 0 : i32
    return %c0_i32, %c0_i32_0 : i32, i32
  }
  func.func @transform_5(%arg0: i32, %arg1: i32) -> (i32, i32) {
    %c0_i32 = arith.constant 0 : i32
    %c0_i32_0 = arith.constant 0 : i32
    return %arg0, %c0_i32 : i32, i32
  }
}

</mosaic_0001>

<bundles_post_ra>
// kernel: tpu_custom_call.1
= control target key start
LH: loop header
LB: loop body
LE: loop exit
PB: predicated region body
PF: predicated region fallthrough
CT: control target
= control target key end

     0   :  { %s422_s0 = inlined_call_operand.vmem [shape: f32[16,32], index: 0, kind: input, shape index: {}]   ;;  %s423_s1 = inlined_call_operand.vmem [shape: f32[32,128], index: 1, kind: input, shape index: {}]   ;;  %s424_s2 = inlined_call_operand.vmem [shape: f32[1,128], index: 2, kind: input, shape index: {}]   ;;  %s425_s3 = inlined_call_operand.vmem [shape: f32[128,32], index: 3, kind: input, shape index: {}]   ;;  %s426_s4 = inlined_call_operand.vmem [shape: f32[1,32], index: 4, kind: input, shape index: {}]   ;;  %s427_s5 = inlined_call_operand.hbm [shape: f32[16,32], index: 5, kind: output, shape index: {}]  }
   0x1   :  { %v37_v0 = vld [vmem:[%s423_s1 + $0x18] sm:$0xff]  ;;  %v36_v1 = vld [vmem:[%s423_s1 + $0x10] sm:$0xff]  ;;  %v35_v2 = vld [vmem:[%s423_s1 + $0x8] sm:$0xff] }
   0x2   :  { %61 = vmatpush.msra.mxu0 %v37_v0 }
   0x4   :  { %62 = vmatpush.msra.mxu0 %v36_v1 }
   0x5   :  { %10 = vsyncpa [#allocation3], 0  ;;  %v34_v3 = vld [vmem:[%s423_s1] sm:$0xff]  ;;  %vm29_vm0 = vcmask 261120   ;;  %v33_v5 = vld [vmem:[%s422_s0 + $0x8] sm:$0xff]  ;;  %s211_s13 = sshll.u32 %s427_s5, 4  ;;  %s212_s13 = int_to_ptr.hbm [resolvable:$true] %s211_s13 }
   0x6   :  { %63 = vmatpush.msra.mxu0 %v35_v2  ;;  %v32_v4 = vld [vmem:[%s422_s0] sm:$0xff]  ;;  %v177_v6 = vld [vmem:[%s425_s3 + $0x78] sm:$0xff]  ;;  %v176_v7 = vld [vmem:[%s425_s3 + $0x70] sm:$0xff]  ;;  %s279_s14 = smov 128   ;;  %s280_s15 = smov 8  }
   0x7   :  { %178 = vmatpush.msra.mxu1 %v177_v6  ;;  %227 = vmatpush.msra.mxu2 %v177_v6  ;;  %v175_v8 = vld [vmem:[%s425_s3 + $0x68] sm:$0xff]  ;;  %v174_v9 = vld [vmem:[%s425_s3 + $0x60] sm:$0xff]  ;;  %v173_v11 = vld [vmem:[%s425_s3 + $0x58] sm:$0xff] }
   0x8   :  { %64 = vmatpush.msra.mxu0 %v34_v3  ;;  %v246_v10 = vld [vmem:[%s424_s2] ss:$0 sm:$0xff]  ;;  %v172_v13 = vld [vmem:[%s425_s3 + $0x50] sm:$0xff]  ;;  %v171_v15 = vld [vmem:[%s425_s3 + $0x48] sm:$0xff] }
   0x9   :  { %223 = vmatmul.msk.f32.vlgmr.msra.gmra.mxu0 %vm29_vm0, %v32_v4  ;;  %179 = vmatpush.msra.mxu1 %v176_v7  ;;  %v170_v17 = vld [vmem:[%s425_s3 + $0x40] sm:$0xff]  ;;  %v169_v19 = vld [vmem:[%s425_s3 + $0x38] sm:$0xff]  ;;  %v168_v20 = vld [vmem:[%s425_s3 + $0x30] sm:$0xff] }
   0xa   :  { %228 = vmatpush.msra.mxu2 %v176_v7  ;;  %v167_v23 = vld [vmem:[%s425_s3 + $0x28] sm:$0xff]  ;;  %v166_v27 = vld [vmem:[%s425_s3 + $0x20] sm:$0xff]  ;;  %v165_v30 = vld [vmem:[%s425_s3 + $0x18] sm:$0xff] }
   0xb   :  { %180 = vmatpush.msra.mxu1 %v175_v8  ;;  %v164_v34 = vld [vmem:[%s425_s3 + $0x10] sm:$0xff]  ;;  %v163_v37 = vld [vmem:[%s425_s3 + $0x8] sm:$0xff]  ;;  %v162_v42 = vld [vmem:[%s425_s3] sm:$0xff] }
   0xc   :  { %229 = vmatpush.msra.mxu2 %v175_v8  ;;  %v247_v62 = vld [vmem:[%s426_s4] ss:$0 sm:$0xff]  ;;  %s278_s4 = smov [#allocation2]  }
   0xd   :  { %181 = vmatpush.msra.mxu1 %v174_v9  ;;  %30 = vst.msk [vmem:[#allocation2] sm:$0xff] %vm29_vm0, %v247_v62  ;;  %s209_s10 = sshll.u32 %s278_s4, 4  ;;  %s210_s10 = int_to_ptr.vmem [resolvable:$true] %s209_s10 }
   0xe   :  { %230 = vmatpush.msra.mxu2 %v174_v9  ;;  %31 = vst.msk [vmem:[#allocation2 + $0x8] sm:$0xff] %vm29_vm0, %v247_v62 }
   0xf   :  { %182 = vmatpush.msra.mxu1 %v173_v11 }
  0x10   :  { %231 = vmatpush.msra.mxu2 %v173_v11 }
  0x11   :  { %224 = vmatmul.msk.f32.gmra.mxu0 %vm29_vm0, %v33_v5  ;;  %183 = vmatpush.msra.mxu1 %v172_v13 }
  0x12   :  { %232 = vmatpush.msra.mxu2 %v172_v13 }
  0x13   :  { %184 = vmatpush.msra.mxu1 %v171_v15 }
  0x14   :  { %233 = vmatpush.msra.mxu2 %v171_v15 }
  0x15   :  { %185 = vmatpush.msra.mxu1 %v170_v17 }
  0x16   :  { %234 = vmatpush.msra.mxu2 %v170_v17 }
  0x17   :  { %186 = vmatpush.msra.mxu1 %v169_v19 }
  0x18   :  { %235 = vmatpush.msra.mxu2 %v169_v19 }
  0x19   :  { %187 = vmatpush.msra.mxu1 %v168_v20 }
  0x1a   :  { %236 = vmatpush.msra.mxu2 %v168_v20 }
  0x1b   :  { %188 = vmatpush.msra.mxu1 %v167_v23 }
  0x1c   :  { %237 = vmatpush.msra.mxu2 %v167_v23 }
  0x1d   :  { %189 = vmatpush.msra.mxu1 %v166_v27 }
  0x1e   :  { %238 = vmatpush.msra.mxu2 %v166_v27 }
  0x1f   :  { %190 = vmatpush.msra.mxu1 %v165_v30 }
  0x20   :  { %239 = vmatpush.msra.mxu2 %v165_v30 }
  0x21   :  { %191 = vmatpush.msra.mxu1 %v164_v34 }
  0x22   :  { %240 = vmatpush.msra.mxu2 %v164_v34 }
  0x23   :  { %192 = vmatpush.msra.mxu1 %v163_v37 }
  0x24   :  { %241 = vmatpush.msra.mxu2 %v163_v37 }
  0x25   :  { %193 = vmatpush.msra.mxu1 %v162_v42 }
  0x26   :  { %242 = vmatpush.msra.mxu2 %v162_v42 }
  0x86   :  { %v66_v12 = vpop.f32.mrf.mxu0 }
  0x87   :  { %v352_v14 = vadd.f32 %v246_v10, %v66_v12 }
  0x89   :  { %v358_v16 = vmul.f32 0.70710677, %v352_v14  ;;  %v72_v34 = vmul.f32 0.5, %v352_v14 }
  0x8b   :  { %v76_v18 = vmul.f32 %v358_v16, %v358_v16 }
  0x8d   :  { %v371_v21 = vmin.f32 %v76_v18, 16.0 }
  0x8e   :  { %v69_v22 = vpop.f32.mrf.mxu0 }
  0x8f   :  { %v78_v24 = vmul.f32 2.1237322e-06, %v371_v21  ;;  %v377_v25 = vadd.f32 %v246_v10, %v69_v22  ;;  %v89_v26 = vmul.f32 3.8918573e-05, %v371_v21 }
  0x91   :  { %v79_v28 = vadd.f32 0.00028619796, %v78_v24  ;;  %v384_v29 = vmul.f32 0.70710677, %v377_v25  ;;  %v90_v31 = vadd.f32 0.001143296, %v89_v26 }
  0x92   :  { %v73_v42 = vmul.f32 0.5, %v377_v25 }
  0x93   :  { %v80_v32 = vmul.f32 %v79_v28, %v371_v21  ;;  %v116_v33 = vmul.f32 %v384_v29, %v384_v29  ;;  %v91_v35 = vmul.f32 %v90_v31, %v371_v21 }
  0x95   :  { %v117_v36 = vmin.f32 %v116_v33, 16.0  ;;  %v92_v38 = vadd.f32 0.014752088, %v91_v35  ;;  %v81_v39 = vadd.f32 0.0036580483, %v80_v32 }
  0x97   :  { %v118_v40 = vmul.f32 2.1237322e-06, %v117_v36  ;;  %v129_v41 = vmul.f32 3.8918573e-05, %v117_v36  ;;  %v93_v43 = vmul.f32 %v92_v38, %v371_v21  ;;  %v82_v47 = vmul.f32 %v81_v39, %v371_v21 }
  0x99   :  { %v119_v44 = vadd.f32 0.00028619796, %v118_v40  ;;  %v130_v45 = vadd.f32 0.001143296, %v129_v41  ;;  %v94_v46 = vadd.f32 0.112945676, %v93_v43 }
  0x9a   :  { %v83_v54 = vadd.f32 0.05243302, %v82_v47 }
  0x9b   :  { %v120_v48 = vmul.f32 %v119_v44, %v117_v36  ;;  %v131_v49 = vmul.f32 %v130_v45, %v117_v36  ;;  %v95_v50 = vmul.f32 %v94_v46, %v371_v21  ;;  %v160_v45 = vld [vmem:[#allocation2] sm:$0xff] }
  0x9c   :  { %v84_v60 = vmul.f32 %v83_v54, %v371_v21 }
  0x9d   :  { %v132_v51 = vadd.f32 0.014752088, %v131_v49  ;;  %v121_v52 = vadd.f32 0.0036580483, %v120_v48  ;;  %v96_v53 = vadd.f32 0.4994258, %v95_v50 }
  0x9e   :  { %v85_v1 = vadd.f32 0.18741608, %v84_v60 }
  0x9f   :  { %v133_v55 = vmul.f32 %v132_v51, %v117_v36  ;;  %v97_v56 = vmul.f32 %v96_v53, %v371_v21  ;;  %v122_v58 = vmul.f32 %v121_v52, %v117_v36 }
  0xa0   :  { %v86_v6 = vmul.f32 %v85_v1, %v371_v21 }
  0xa1   :  { %v134_v57 = vadd.f32 0.112945676, %v133_v55  ;;  %v98_v59 = vadd.f32 1.0, %v97_v56  ;;  %v123_v0 = vadd.f32 0.05243302, %v122_v58 }
  0xa2   :  { %v87_v11 = vadd.f32 1.1283791, %v86_v6 }
  0xa3   :  { %v135_v61 = vmul.f32 %v134_v57, %v117_v36  ;;  %248 = vrcp.f32 %v98_v59  ;;  %v124_v5 = vmul.f32 %v123_v0, %v117_v36  ;;  %v110_v10 = vand.u32 2147483648, %v98_v59 }
  0xa4   :  { %v108_v13 = vand.u32 2147483647, %v98_v59  ;;  %vm104_vm2 = vweird.f32 %v98_v59  ;;  %v88_v22 = vmul.f32 %v87_v11, %v358_v16 }
  0xa5   :  { %v136_v63 = vadd.f32 0.4994258, %v135_v61  ;;  %v125_v9 = vadd.f32 0.18741608, %v124_v5  ;;  %v111_v19 = vor.u32 1.1754944e-38, %v110_v10 }
  0xa6   :  { %vm109_vm4 = vcmp.eq.f32.partialorder %v108_v13, 8.507059e+37 }
  0xa7   :  { %v137_v2 = vmul.f32 %v136_v63, %v117_v36  ;;  %v126_v18 = vmul.f32 %v125_v9, %v117_v36 }
  0xa9   :  { %v138_v3 = vadd.f32 1.0, %v137_v2  ;;  %v249_v4 = vpop.eup %248  ;;  %v127_v28 = vadd.f32 1.1283791, %v126_v18 }
  0xaa   :  { %v100_v7 = vmul.f32 %v249_v4, %v98_v59  ;;  %vm105_vm1 = vweird.f32 %v249_v4 }
  0xab   :  { %250 = vrcp.f32 %v138_v3  ;;  %vm106_vm3 = vmor %vm104_vm2, %vm105_vm1  ;;  %v150_v27 = vand.u32 2147483648, %v138_v3  ;;  %v148_v31 = vand.u32 2147483647, %v138_v3  ;;  %vm144_vm6 = vweird.f32 %v138_v3 }
  0xac   :  { %v101_v8 = vsub.f32 1.0, %v100_v7  ;;  %v128_v16 = vmul.f32 %v127_v28, %v384_v29  ;;  %v161_v29 = vld [vmem:[#allocation2 + $0x8] sm:$0xff] }
  0xad   :  { %v151_v36 = vor.u32 1.1754944e-38, %v150_v27  ;;  %vm149_vm8 = vcmp.eq.f32.partialorder %v148_v31, 8.507059e+37 }
  0xae   :  { %v102_v12 = vmul.f32 %v249_v4, %v101_v8 }
  0xb0   :  { %v103_v17 = vadd.f32 %v249_v4, %v102_v12 }
  0xb1   :  { %v251_v15 = vpop.eup %250 }
  0xb2   :  { %v140_v20 = vmul.f32 %v251_v15, %v138_v3  ;;  %v107_v23 = vsel %vm106_vm3, %v249_v4, %v103_v17  ;;  %vm145_vm5 = vweird.f32 %v251_v15 }
  0xb3   :  { %v112_v21 = vsel %vm109_vm4, %v111_v19, %v107_v23  ;;  %vm146_vm7 = vmor %vm144_vm6, %vm145_vm5 }
  0xb4   :  { %v141_v24 = vsub.f32 1.0, %v140_v20  ;;  %v113_v26 = vmul.f32 %v112_v21, %v88_v22 }
  0xb6   :  { %v142_v30 = vmul.f32 %v251_v15, %v141_v24  ;;  %v225_v32 = vclamps-f32 %v113_v26, 1.0 }
  0xb8   :  { %v143_v33 = vadd.f32 %v251_v15, %v142_v30  ;;  %v156_v35 = vadd.f32 1.0, %v225_v32 }
  0xba   :  { %v147_v37 = vsel %vm146_vm7, %v251_v15, %v143_v33  ;;  %v158_v38 = vmul.f32 %v156_v35, %v72_v34 }
  0xbb   :  { %v152_v39 = vsel %vm149_vm8, %v151_v36, %v147_v37 }
  0xbc   :  { %v153_v40 = vmul.f32 %v152_v39, %v128_v16  ;;  %194 = vmatmul.f32.vlgmr.msra.gmra.mxu1 %v158_v38 }
  0xbe   :  { %v226_v41 = vclamps-f32 %v153_v40, 1.0 }
  0xc0   :  { %v157_v43 = vadd.f32 1.0, %v226_v41 }
  0xc2   :  { %v159_v44 = vmul.f32 %v157_v43, %v73_v42 }
  0xc4   :  { %197 = vmatmul.f32.vlgmr.msra.gmra.mxu2 %v159_v44 }
 0x139   :  { %v195_v46 = vpop.f32.mrf.mxu1 }
 0x13a   :  { %v201_v14 = vadd.f32 %v195_v46, %v160_v45 }
 0x13c   :  { %203 = vst.msk [vmem:[#allocation2] sm:$0xff] %vm29_vm0, %v201_v14 }
 0x147   :  { %v198_v47 = vpop.f32.mrf.mxu2 }
 0x148   :  { %v202_v48 = vadd.f32 %v198_v47, %v161_v29 }
 0x14a   :  { %204 = vst.msk [vmem:[#allocation2 + $0x8] sm:$0xff] %vm29_vm0, %v202_v48 }
 0x14b   :  { %217 = dma.vmem_to_hbm [thread:$0]  %s210_s10, 256, %s212_s13, [#allocation3], %s279_s14, %s279_s14, %s280_s15  }
 0x14c   :  { %276 = dma.done.wait [#allocation3], 256  }
 0x14d   :  { %277 = vsyncadd [#allocation3], 4294967040 }
 0x14e   :  { %222 = vsyncpa [#allocation3], 1 }

</bundles_post_ra>
